<compile_context>
chip_gen: v7x
topology: tpu7x:2x2x1
jax: 0.10.0
libtpu: 0.0.40
codegen_flags: <defaults>
</compile_context>

<pallas_src>
import functools

import jax
import jax.numpy as jnp
from jax.experimental import pallas as pl
from jax.experimental.pallas import tpu as pltpu

LANE = 128   # lane width
SUB = 16     # keep length tiles multiples of 16 (bf16 sublane packing)


def _rup(a, m):
    return -(-a // m) * m


def _conv1d_kernel(x_ref, xh_ref, w_ref, b_ref, o_ref, *,
                   kernel_size, stride, dilation, t_tile, has_bias):
    # x_ref : (1, S_in,  C_in_p)   main input block for this length tile (bf16)
    # xh_ref: (1, H_blk, C_in_p)   right halo rows (bf16)
    # w_ref : (K*C_in_p, C_out_p)  im2col weight, resident (bf16)
    # b_ref : (1, C_out_p)         f32 bias
    # o_ref : (1, T_TILE, C_out_p) f32 output tile
    c_in_p = x_ref.shape[2]
    xw = jnp.concatenate([x_ref[0], xh_ref[0]], axis=0)      # (S_in + H_blk, C_in_p)

    taps = []
    for k in range(kernel_size):                              # K is small & static -> unrolled
        start = k * dilation
        stop = start + (t_tile - 1) * stride + 1
        taps.append(jax.lax.slice(xw, (start, 0), (stop, c_in_p), (stride, 1)))
    cols = taps[0] if kernel_size == 1 else jnp.concatenate(taps, axis=1)  # (T_TILE, K*C_in_p)

    acc = jnp.dot(cols, w_ref[...], preferred_element_type=jnp.float32)    # single MXU matmul
    if has_bias:
        acc = acc + b_ref[...]
    o_ref[0] = acc.astype(o_ref.dtype)


def conv1d_blc_pallas(x_blc, weight_kc, bias_p, *, kernel_size, stride, dilation,
                      padding, c_out, has_bias=True):
    """x_blc: (B, T, C) activations (C == C_in or already lane-padded C_in_p);
    weight_kc: (K*C_in_p, C_out_p) bf16; bias_p: (1, C_out_p) f32."""
    B, T, C = x_blc.shape
    kcp, c_out_p = weight_kc.shape
    c_in_p = kcp // kernel_size

    t_pad = T + 2 * padding
    t_out = (t_pad - dilation * (kernel_size - 1) - 1) // stride + 1
    assert t_out >= 1, "sequence too short for this conv config"

    # --- tile sizing -------------------------------------------------------
    h = max(0, dilation * (kernel_size - 1) - stride + 1)     # receptive-field overhang
    h_blk = _rup(max(h, 1), SUB)
    # keep the f32 result tile <= ~128 KiB (32 vregs), cap at 256 rows, round to 16
    t_tile = max(SUB, min(256, max(SUB, (32768 // c_out_p) // SUB * SUB), _rup(t_out, SUB)))
    # correctness: one halo block must cover the overhang
    t_tile = max(t_tile, _rup(-(-h_blk // stride), SUB))
    s_in = t_tile * stride
    if s_in % h_blk != 0:
        h_blk = s_in                                          # fall back to "next full block"
    halo_ratio = s_in // h_blk

    n_t = -(-t_out // t_tile)
    t_out_p = n_t * t_tile
    t_x = n_t * s_in + h_blk                                  # padded input length

    # --- input prep (bf16, lane pad, length pad) --------------------------
    x_blc = x_blc.astype(jnp.bfloat16)
    cpad = c_in_p - C
    right = t_x - padding - T
    if right >= 0:
        xp = jnp.pad(x_blc, ((0, 0), (padding, right), (0, cpad)))
    else:
        xp = jnp.pad(x_blc, ((0, 0), (padding, 0), (0, cpad)))[:, :t_x]

    kernel = functools.partial(_conv1d_kernel, kernel_size=kernel_size,
                               stride=stride, dilation=dilation,
                               t_tile=t_tile, has_bias=has_bias)

    y = pl.pallas_call(
        kernel,
        out_shape=jax.ShapeDtypeStruct((B, t_out_p, c_out_p), jnp.float32),
        grid_spec=pltpu.PrefetchScalarGridSpec(
            num_scalar_prefetch=0,
            grid=(B, n_t),
            in_specs=[
                pl.BlockSpec((1, s_in, c_in_p), lambda b, t: (b, t, 0)),
                pl.BlockSpec((1, h_blk, c_in_p),
                             lambda b, t: (b, (t + 1) * halo_ratio, 0)),
                pl.BlockSpec((kcp, c_out_p), lambda b, t: (0, 0)),
                pl.BlockSpec((1, c_out_p), lambda b, t: (0, 0)),
            ],
            out_specs=pl.BlockSpec((1, t_tile, c_out_p), lambda b, t: (b, t, 0)),
        ),
        compiler_params=pltpu.CompilerParams(
            dimension_semantics=("parallel", "parallel"),
            vmem_limit_bytes=32 * 1024 * 1024,
        ),
    )(xp, xp, weight_kc, bias_p)

    if t_out_p != t_out or c_out_p != c_out:
        y = y[:, :t_out, :c_out]
    return y


class CNN1DPallas:
    """JAX/Pallas port of CNN_1D.forward (Embedding -> Conv1d -> transpose back, lens update)."""

    def __init__(self, inputs, channels, kernel_size, stride, dilation,
                 padding=0, bias=True, num_embeddings=None, key=None):
        if key is None:
            key = jax.random.PRNGKey(0)
        k_emb, k_w, k_b = jax.random.split(key, 3)

        self.inputs = inputs
        self.channels = channels
        self.kernel_size = kernel_size
        self.stride = stride
        self.dilation = dilation
        self.padding = padding
        self.has_bias = bias

        c_in_p = _rup(inputs, LANE)
        c_out_p = _rup(channels, LANE)

        if num_embeddings is not None:
            emb = jax.random.normal(k_emb, (num_embeddings + 1, inputs), jnp.float32)
            emb = emb.at[0].set(0.0)                      # padding_idx=0 -> zero row
            emb = emb.astype(jnp.bfloat16)
            self.emb_f32 = emb.astype(jnp.float32)        # bf16-rounded reference copy
            # lane-pad the table once so gathered activations are 128-dense with no extra pass
            self.emb = jnp.pad(emb, ((0, 0), (0, c_in_p - inputs)))
        else:
            self.emb = None
            self.emb_f32 = None

        # PyTorch Conv1d weight layout (C_out, C_in, K); deterministic uniform init.
        fan_in = inputs * kernel_size
        bound = 1.0 / (fan_in ** 0.5)
        w_oik = jax.random.uniform(k_w, (channels, inputs, kernel_size),
                                   jnp.float32, -bound, bound)
        w_oik = w_oik.astype(jnp.bfloat16).astype(jnp.float32)   # bf16-rounded master
        self.weight_oik = w_oik                                  # reference (torch) layout
        # kernel layout: (K, C_in, C_out) -> lane-pad channels -> (K*C_in_p, C_out_p) bf16
        w_kio = jnp.transpose(w_oik, (2, 1, 0))
        w_kio = jnp.pad(w_kio, ((0, 0), (0, c_in_p - inputs), (0, c_out_p - channels)))
        self.weight_kc = w_kio.reshape(kernel_size * c_in_p, c_out_p).astype(jnp.bfloat16)

        if bias:
            b = jax.random.uniform(k_b, (channels,), jnp.float32, -bound, bound)
        else:
            b = jnp.zeros((channels,), jnp.float32)
        self.bias = b
        self.bias_p = jnp.pad(b, (0, c_out_p - channels)).reshape(1, c_out_p)

    def __call__(self, x, lens):
        # x: int ids (B, T) if embedding is present, else float (B, T, inputs)
        if self.emb is not None:
            # TODO(synk): fuse the embedding gather into the kernel via scalar-prefetched ids.
            x = jnp.take(self.emb, x, axis=0)             # (B, T, C_in_p) bf16, lane-dense
        y = conv1d_blc_pallas(x, self.weight_kc, self.bias_p,
                              kernel_size=self.kernel_size, stride=self.stride,
                              dilation=self.dilation, padding=self.padding,
                              c_out=self.channels, has_bias=self.has_bias)
        # lens update exactly as in the torch code (uses kernel_size/stride only)
        lens_new = (((lens - self.kernel_size).astype(jnp.float32) / self.stride)
                    .astype(jnp.int32) + 1)
        return y, lens_new


if __name__ == "__main__":
    key = jax.random.PRNGKey(0)
    B, T = 2, 16
    inputs, channels = 8, 16
    kernel_size, stride, dilation, padding = 3, 1, 1, 0
    num_embeddings = 32

    model = CNN1DPallas(inputs, channels, kernel_size, stride, dilation,
                        padding=padding, bias=True,
                        num_embeddings=num_embeddings, key=key)

    k_ids, _ = jax.random.split(jax.random.PRNGKey(1))
    ids = jax.random.randint(k_ids, (B, T), 1, num_embeddings + 1, dtype=jnp.int32)
    lens = jnp.array([T, T - 4], dtype=jnp.int32)

    out, out_lens = model(ids, lens)
    out = jax.block_until_ready(out)
    out_lens = jax.block_until_ready(out_lens)

    # Reference: same bf16-rounded embedding/weights, f32 conv via XLA (NCW, like torch Conv1d).
    x_f32 = jnp.take(model.emb_f32, ids, axis=0)                    # (B, T, C_in) f32
    x_ncw = jnp.transpose(x_f32, (0, 2, 1))                         # (B, C_in, T)
    ref = jax.lax.conv_general_dilated(
        x_ncw, model.weight_oik,
        window_strides=(stride,), padding=[(padding, padding)],
        rhs_dilation=(dilation,),
        dimension_numbers=("NCW", "OIW", "NCW"))
    ref = jnp.transpose(ref + model.bias[None, :, None], (0, 2, 1))  # (B, T_out, C_out)

    assert out.shape == ref.shape, (out.shape, ref.shape)
    err = float(jnp.max(jnp.abs(out - ref)))
    assert err < 1e-3, err
    expected_lens = ((lens - kernel_size).astype(jnp.float32) / stride).astype(jnp.int32) + 1
    assert bool(jnp.all(out_lens == expected_lens))

    print("KERNEL_OK")
</pallas_src>

<mosaic_0001>
module attributes {stable_mosaic.version = 11 : i64} {
  func.func @_conv1d_kernel(%arg0: i32, %arg1: i32, %arg2: memref<1x16x128xbf16, #tpu.memory_space<vmem>>, %arg3: memref<1x16x128xbf16, #tpu.memory_space<vmem>>, %arg4: memref<384x128xbf16, #tpu.memory_space<vmem>>, %arg5: memref<1x128xf32, #tpu.memory_space<vmem>>, %arg6: memref<1x16x128xf32, #tpu.memory_space<vmem>>) attributes {dimension_semantics = [#tpu.dimension_semantics<parallel>, #tpu.dimension_semantics<parallel>], iteration_bounds = array<i64: 2, 1>, scalar_prefetch = 0 : i64, scratch_operands = 0 : i64, tpu.core_type = #tpu.core_type<tc>, window_params = [{transform_indices = @transform_0, window_bounds = array<i64: 1, 16, 128>}, {transform_indices = @transform_1, window_bounds = array<i64: 1, 16, 128>}, {pipeline_mode = #tpu.pipeline_mode<synchronous>, transform_indices = @transform_2, window_bounds = array<i64: 384, 128>}, {pipeline_mode = #tpu.pipeline_mode<synchronous>, transform_indices = @transform_3, window_bounds = array<i64: 1, 128>}, {transform_indices = @transform_4, window_bounds = array<i64: 1, 16, 128>}]} {
    %c0 = arith.constant 0 : index
    %c0_0 = arith.constant 0 : index
    %c0_1 = arith.constant 0 : index
    %0 = vector.load %arg2[%c0, %c0_0, %c0_1] : memref<1x16x128xbf16, #tpu.memory_space<vmem>>, vector<1x16x128xbf16>
    %1 = vector.shape_cast %0 : vector<1x16x128xbf16> to vector<16x128xbf16>
    %c0_2 = arith.constant 0 : index
    %c0_3 = arith.constant 0 : index
    %c0_4 = arith.constant 0 : index
    %2 = vector.load %arg3[%c0_2, %c0_3, %c0_4] : memref<1x16x128xbf16, #tpu.memory_space<vmem>>, vector<1x16x128xbf16>
    %3 = vector.shape_cast %2 : vector<1x16x128xbf16> to vector<16x128xbf16>
    %4 = tpu.concatenate %1, %3 in 0 : vector<16x128xbf16>, vector<16x128xbf16> -> vector<32x128xbf16>
    %5 = vector.extract_strided_slice %4 {offsets = [0, 0], sizes = [16, 128], strides = [1, 1]} : vector<32x128xbf16> to vector<16x128xbf16>
    %6 = vector.extract_strided_slice %4 {offsets = [1, 0], sizes = [16, 128], strides = [1, 1]} : vector<32x128xbf16> to vector<16x128xbf16>
    %7 = vector.extract_strided_slice %4 {offsets = [2, 0], sizes = [16, 128], strides = [1, 1]} : vector<32x128xbf16> to vector<16x128xbf16>
    %8 = tpu.concatenate %5, %6, %7 in 1 : vector<16x128xbf16>, vector<16x128xbf16>, vector<16x128xbf16> -> vector<16x384xbf16>
    %c0_5 = arith.constant 0 : index
    %c0_6 = arith.constant 0 : index
    %9 = vector.load %arg4[%c0_5, %c0_6] : memref<384x128xbf16, #tpu.memory_space<vmem>>, vector<384x128xbf16>
    %cst = arith.constant dense<0.000000e+00> : vector<16x128xf32>
    %10 = tpu.matmul %8, %9, %cst {dimension_numbers = #tpu.dot_dimension_numbers<[1], [0], [0], [1], [0, 0, 1, 1], [], []>} : vector<16x384xbf16>, vector<384x128xbf16>, vector<16x128xf32> -> vector<16x128xf32>
    %c0_7 = arith.constant 0 : index
    %c0_8 = arith.constant 0 : index
    %11 = vector.load %arg5[%c0_7, %c0_8] : memref<1x128xf32, #tpu.memory_space<vmem>>, vector<1x128xf32>
    %12 = vector.broadcast %11 : vector<1x128xf32> to vector<16x128xf32>
    %13 = arith.addf %10, %12 : vector<16x128xf32>
    %c0_9 = arith.constant 0 : index
    %c0_10 = arith.constant 0 : index
    %c0_11 = arith.constant 0 : index
    %14 = vector.load %arg6[%c0_9, %c0_10, %c0_11] : memref<1x16x128xf32, #tpu.memory_space<vmem>>, vector<1x16x128xf32>
    %15 = vector.shape_cast %14 : vector<1x16x128xf32> to vector<16x128xf32>
    %16 = vector.shape_cast %13 : vector<16x128xf32> to vector<1x16x128xf32>
    tpu.vector_store %arg6[%c0_9, %c0_10, %c0_11], %16 {strides = array<i32>} : memref<1x16x128xf32, #tpu.memory_space<vmem>>, vector<1x16x128xf32>,
    return
  }
  func.func @transform_0(%arg0: i32, %arg1: i32) -> (i32, i32, i32) {
    %c0_i32 = arith.constant 0 : i32
    %c0_i32_0 = arith.constant 0 : i32
    return %arg0, %arg1, %c0_i32 : i32, i32, i32
  }
  func.func @transform_1(%arg0: i32, %arg1: i32) -> (i32, i32, i32) {
    %c1_i32 = arith.constant 1 : i32
    %0 = arith.addi %arg1, %c1_i32 : i32
    %c1_i32_0 = arith.constant 1 : i32
    %1 = arith.muli %0, %c1_i32_0 : i32
    %c0_i32 = arith.constant 0 : i32
    %c0_i32_1 = arith.constant 0 : i32
    return %arg0, %1, %c0_i32 : i32, i32, i32
  }
  func.func @transform_2(%arg0: i32, %arg1: i32) -> (i32, i32) {
    %c0_i32 = arith.constant 0 : i32
    %c0_i32_0 = arith.constant 0 : i32
    %c0_i32_1 = arith.constant 0 : i32
    return %c0_i32, %c0_i32_0 : i32, i32
  }
  func.func @transform_3(%arg0: i32, %arg1: i32) -> (i32, i32) {
    %c0_i32 = arith.constant 0 : i32
    %c0_i32_0 = arith.constant 0 : i32
    %c0_i32_1 = arith.constant 0 : i32
    return %c0_i32, %c0_i32_0 : i32, i32
  }
  func.func @transform_4(%arg0: i32, %arg1: i32) -> (i32, i32, i32) {
    %c0_i32 = arith.constant 0 : i32
    %c0_i32_0 = arith.constant 0 : i32
    return %arg0, %arg1, %c0_i32 : i32, i32, i32
  }
}

</mosaic_0001>

<bundles_post_ra>
// kernel: tpu_custom_call.1
= control target key start
LH: loop header
LB: loop body
LE: loop exit
PB: predicated region body
PF: predicated region fallthrough
CT: control target
= control target key end

     0   :  { %s1473_s0 = inlined_call_operand.hbm [shape: bf16[2,32,128], index: 0, kind: input, shape index: {}]   ;;  %s1474_s1 = inlined_call_operand.hbm [shape: bf16[2,32,128], index: 1, kind: input, shape index: {}]   ;;  %s1475_s2 = inlined_call_operand.hbm [shape: bf16[384,128], index: 2, kind: input, shape index: {}]   ;;  %s1476_s3 = inlined_call_operand.vmem [shape: f32[1,128], index: 3, kind: input, shape index: {}]   ;;  %s1477_s4 = inlined_call_operand.hbm [shape: f32[2,16,128], index: 4, kind: output, shape index: {}]  }
   0x1   :  { %1488 = sst [smem:[#allocation17_spill]] %s1473_s0 }
   0x2   :  { %1489 = sst [smem:[#allocation18_spill]] %s1475_s2 }
   0x3   :  { %9 = vsyncpa [#allocation3], 0 }
   0x4   :  { %11 = vsyncpa [#allocation3 + $0x1], 0 }
   0x5   :  { %12 = vsyncpa [#allocation6], 0 }
   0x6   :  { %14 = vsyncpa [#allocation6 + $0x1], 0 }
   0x7   :  { %15 = vsyncpa [#allocation4], 0 }
   0x8   :  { %17 = vsyncpa [#allocation4 + $0x1], 0  ;;  %s1184_s15 = smov 0   ;;  %s1186_s16 = smov 0  }
   0x9   :  { %s1188_s17 = smov 0   ;;  %s1190_s18 = smov 0  }
   0xa   :  { %s1192_s19 = smov 0   ;;  %s1194_s20 = smov 0  }
   0xb LB: > { %1490 = sst [smem:[#allocation13_spill]] %s1135_s17  ;;  %s1215_s21 = sadd.s32 4294967295, %s1147_s20   ;;  %s1147_s20 = sphi %s1194_s20, %s23_s20   ;;  %s1143_s19 = sphi %s1192_s19, %s1515_s19   ;;  %s1139_s18 = sphi %s1190_s18, %s1514_s18   ;;  %s1135_s17 = sphi %s1188_s17, %s1513_s17   ;;  %s1131_s16 = sphi %s1186_s16, %s1517_s16   ;;  %s1127_s15 = sphi %s1184_s15, %s1516_s15  }
   0xc   : > { %1491 = sst [smem:[#allocation14_spill]] %s1143_s19  ;;  %s757_s22 = sadd.s32 4294967294, %s1147_s20  }
   0xd   : > { %p57_p0 = scmp.ne.s32.totalorder %s1131_s16, %s1127_s15  ;;  %p1478_p1 = scmp.eq.s32.totalorder %s1215_s21, 0 }
   0xe   : > { %p161_p3 = scmp.eq.s32.totalorder %s757_s22, 1  ;;  %p758_p5 = scmp.ge.s32.totalorder %s1147_s20, 1 }
   0xf   : > { %p1224_p4 = por %p1478_p1, %p57_p0  ;;  %p168_p7 = scmp.lt.s32.totalorder %s1147_s20, 3 }
  0x10   : > { %p1229_p6 = por %p161_p3, %p57_p0  ;;  %s1149_s26 = smov [#allocation7]  }
  0x11   : > { %s1492_s23 = scalar_select %p1224_p4, 1, 0 }
  0x12   : > { %s1493_s24 = scalar_select %p1229_p6, 1, 0 }
  0x13   : > { %p1234_p8 = pnand %p758_p5, %p168_p7  ;;  %s180_s27 = sshll.u32 %s1149_s26, 4  ;;  %s181_s27 = int_to_ptr.vmem [resolvable:$true] %s180_s27 }
  0x14   : > { %s35_s29 = sadd.s32 1, %s1143_s19  ;;  %s1496_s2 = sld [smem:[#allocation18_spill]] }
  0x15   : > { %s1494_s25 = scalar_select %p1234_p8, 1, 0 }
  0x16   : > { %p868_p9 = pneg %p1234_p8 }
  0x18   : > { %p1243_p11 = pnand %p868_p9, %p1478_p1 }
  0x1a   : > { %s968_s6 = scalar_lea.hbm %s1496_s2, 3072  ;;  %p970_p13 = pneg %p1243_p11 }
  0x1b   : > { %p969_p12 = scmp.ne.s32.totalorder %s1496_s2, %s968_s6  ;;  %p975_p5 = scmp.lt.u32.totalorder %s968_s6, %s1496_s2 }
  0x1d   : > { %p971_p0 = pnand %p970_p13, %p969_p12 }
  0x1f   : > { %p972_p3 = pneg %p971_p0 }
  0x21   : > { %p977_p7 = pnand %p975_p5, %p972_p3 }
  0x23   : > { %980 = shalt.err (!%p977_p7)
}
  0x24   : > { %s981_s11 = scalar_lea.vmem %s181_s27, 3072  ;;  %p989_p2 = scmp.lt.s32.totalorder %s181_s27, %s181_s27 }
  0x25   : > { %p982_p9 = scmp.ne.s32.totalorder %s181_s27, %s981_s11  ;;  %p990_p6 = scmp.lt.s32.totalorder %s981_s11, %s981_s11 }
  0x27   : > { %p984_p10 = pnand %p982_p9, %p970_p13  ;;  %p991_p4 = por %p990_p6, %p989_p2 }
  0x29   : > { %p985_p1 = pneg %p984_p10 }
  0x2b   : > { %p992_p8 = pnand %p991_p4, %p985_p1 }
  0x2d   : > { %995 = shalt.err (!%p992_p8)
}
  0x2e   : > { %s1481_s12 = smov 64   ;;  %s1483_s13 = smov 4  }
  0x2f   : > { %871 = dma.hbm_to_vmem [thread:$0]  (!%p1243_p11), %s1496_s2, 3072, %s181_s27, [#allocation6], %s1481_s12, %s1481_s12, %s1483_s13  }
  0x30   : > { %p37_p1 = scmp.ge.s32.totalorder %s35_s29, 2  ;;  %s44_s26 = sadd.s32 1, %s1135_s17 }
  0x31   : > { %p51_p2 = scmp.ne.s32.totalorder %s1135_s17, %s1131_s16  ;;  %p52_p4 = scmp.eq.s32.totalorder %s1147_s20, 0 }
  0x32   : > { %s1519_s29 = smov (%p37_p1, %s35_s29), 0  ;;  %p1499_p8 = scmp.eq.s32.totalorder %s1215_s21, 1 }
  0x33   : > { %1497 = sst [smem:[#allocation15_spill]] %s1519_s29  ;;  %p1273_p6 = por %p52_p4, %p51_p2 }
  0x34   : > { %p1279_p10 = por %p1499_p8, %p51_p2  ;;  %s39_s5 = ssub.s32 %s1143_s19, %s1519_s29 }
  0x35   : > { %p884_p12 = scmp.lt.s32.totalorder %s1147_s20, 2  ;;  %p42_p11 = scmp.eq.s32.totalorder %s39_s5, 0 }
  0x36   : > { %s197_s27 = sand.u32 1, %s1135_s17   ;;  %s804_s8 = sshll.u32 %s1143_s19, 8 }
  0x37   : > { %s1287_s6 = sshll.u32 %s197_s27, 3  ;;  %s1502_s0 = sld [smem:[#allocation17_spill]] }
  0x38   : > { %s1290_s7 = scalar_select %p42_p11, %s1135_s17, %s44_s26  }
  0x39   : > { %s201_s14 = scalar_lea.vmem [#allocation2], %s1287_s6  ;;  %p1303_p13 = pnand %p884_p12, %p1273_p6 }
  0x3a   : > { %1501 = sst [smem:[#allocation16_spill]] %s1290_s7  ;;  %s210_s22 = sshll.u32 %s201_s14, 4  ;;  %s1299_s22 = int_to_ptr.vmem [resolvable:$true] %s210_s22 }
  0x3b   : > { %s1310_s9 = scalar_lea.hbm %s1474_s1, %s804_s8  ;;  %s1315_s13 = scalar_lea.sflag [#allocation3], %s197_s27 }
  0x3c   : > { %s1313_s10 = scalar_lea.hbm %s1310_s9, 128  ;;  %p998_p3 = pneg %p1303_p13 }
  0x3d   : > { %s1296_s11 = scalar_lea.hbm %s1502_s0, %s804_s8  ;;  %s1001_s12 = scalar_lea.hbm %s1502_s0, 512 }
  0x3e   : > { %s996_s14 = scalar_lea.hbm %s1296_s11, 128  ;;  %p1002_p9 = scmp.lt.u32.totalorder %s1296_s11, %s1502_s0 }
  0x3f   : > { %p997_p0 = scmp.ne.s32.totalorder %s1296_s11, %s996_s14  ;;  %p1003_p1 = scmp.lt.u32.totalorder %s1001_s12, %s996_s14 }
  0x40   : > { %p1005_p4 = scmp.lt.u32.totalorder %s996_s14, %s1296_s11 }
  0x41   : > { %p999_p5 = pnand %p998_p3, %p997_p0  ;;  %p1004_p2 = por %p1003_p1, %p1002_p9 }
  0x43   : > { %p1000_p7 = pneg %p999_p5  ;;  %p1006_p6 = por %p1005_p4, %p1004_p2 }
  0x45   : > { %p1007_p8 = pnand %p1006_p6, %p1000_p7 }
  0x47   : > { %1010 = shalt.err (!%p1007_p8)
}
  0x48   : > { %s1011_s27 = scalar_lea.vmem %s1299_s22, 128  ;;  %s1152_s2 = smov [#allocation2]  }
  0x49   : > { %p1012_p12 = scmp.ne.s32.totalorder %s1299_s22, %s1011_s27  ;;  %s1016_s30 = sshll.u32 %s1152_s2, 4  ;;  %s1017_s30 = int_to_ptr.vmem [resolvable:$false] %s1016_s30 }
  0x4a   : > { %s1018_s26 = scalar_lea.vmem %s1017_s30, 256  ;;  %p1019_p5 = scmp.lt.s32.totalorder %s1299_s22, %s1017_s30 }
  0x4b   : > { %p1014_p11 = pnand %p1012_p12, %p998_p3  ;;  %p1020_p9 = scmp.lt.s32.totalorder %s1018_s26, %s1011_s27 }
  0x4d   : > { %p1015_p0 = pneg %p1014_p11  ;;  %p1021_p1 = por %p1020_p9, %p1019_p5 }
  0x4f   : > { %p1022_p2 = pnand %p1021_p1, %p1015_p0 }
  0x51   : > { %1025 = shalt.err (!%p1022_p2)
}
  0x52   : > { %s1504_s14 = smov 4   ;;  %s1505_s12 = smov 64  }
  0x53   : > { %875 = dma.hbm_to_vmem [thread:$0]  (!%p1303_p13), %s1296_s11, 128, %s1299_s22, %s1315_s13, %s1505_s12, %s1505_s12, %s1504_s14  }
  0x54   : > { %s224_s8 = scalar_lea.vmem [#allocation5], %s1287_s6  ;;  %s220_s2 = sand.u32 1, %s1147_s20  }
  0x55   : > { %s234_s27 = sshll.u32 %s224_s8, 4  ;;  %s1350_s30 = scalar_lea.sflag [#allocation6], %s220_s2  ;;  %s1348_s27 = int_to_ptr.vmem [resolvable:$true] %s234_s27 }
  0x56   : > { %s1056_s26 = scalar_lea.hbm %s1310_s9, 256  ;;  %s1031_s19 = scalar_lea.hbm %s1474_s1, 512 }
  0x57   : > { %p1027_p7 = scmp.ne.s32.totalorder %s1313_s10, %s1056_s26  ;;  %p1032_p8 = scmp.lt.u32.totalorder %s1313_s10, %s1474_s1 }
  0x58   : > { %p1033_p12 = scmp.lt.u32.totalorder %s1031_s19, %s1056_s26  ;;  %p1035_p0 = scmp.lt.u32.totalorder %s1056_s26, %s1313_s10 }
  0x59   : > { %p1029_p4 = pnand %p1027_p7, %p998_p3 }
  0x5a   : > { %p1034_p11 = por %p1033_p12, %p1032_p8 }
  0x5b   : > { %p1030_p6 = pneg %p1029_p4 }
  0x5c   : > { %p1036_p5 = por %p1035_p0, %p1034_p11 }
  0x5e   : > { %p1037_p9 = pnand %p1036_p5, %p1030_p6 }
  0x60   : > { %1040 = shalt.err (!%p1037_p9)
}
  0x61   : > { %s1041_s13 = scalar_lea.vmem %s1348_s27, 128  ;;  %s1153_s0 = smov [#allocation5]  }
  0x62   : > { %p1042_p1 = scmp.ne.s32.totalorder %s1348_s27, %s1041_s13  ;;  %s1046_s29 = sshll.u32 %s1153_s0, 4  ;;  %s1047_s29 = int_to_ptr.vmem [resolvable:$false] %s1046_s29 }
  0x63   : > { %s1048_s17 = scalar_lea.vmem %s1047_s29, 256  ;;  %p1049_p4 = scmp.lt.s32.totalorder %s1348_s27, %s1047_s29 }
  0x64   : > { %p1044_p2 = pnand %p1042_p1, %p998_p3  ;;  %p1050_p8 = scmp.lt.s32.totalorder %s1048_s17, %s1041_s13 }
  0x66   : > { %p1045_p7 = pneg %p1044_p2  ;;  %p1051_p12 = por %p1050_p8, %p1049_p4 }
  0x68   : > { %p1052_p11 = pnand %p1051_p12, %p1045_p7 }
  0x6a   : > { %1055 = shalt.err (!%p1052_p11)
}
  0x6b   : > { %878 = dma.hbm_to_vmem [thread:$0]  (!%p1303_p13), %s1313_s10, 128, %s1348_s27, %s1350_s30, %s1505_s12, %s1505_s12, %s1504_s14  }
  0x6c   : > { %p1506_p3 = scmp.ne.s32.totalorder %s1494_s25, 0 }
  0x6d   : > { %s1382_s19 = sand.u32 (!%p1506_p3), 1, %s1131_s16   ;;  %p1507_p6 = scmp.ne.s32.totalorder (!%p1506_p3), %s1492_s23, 0 }
  0x6e   : > { %246 = sbr.rel (%p1506_p3) target bundleno = 394 (0x18a), region = 36  ;;  %s768_s6 = sshll.u32 (!%p1506_p3), %s1382_s19, 3 }
  0x6f   : > { %s249_s7 = scalar_lea.sflag (!%p1506_p3), [#allocation3], %s1382_s19  ;;  %s1386_s11 = scalar_lea.vmem (!%p1506_p3), [#allocation2], %s768_s6 }
  0x75   : > { %1110 = dma.done.wait (%p1507_p6), %s249_s7, 128  }
  0x76   : > { %1112 = vsyncadd (%p1507_p6), %s249_s7, 4294967168  ;;  %s257_s22 = sand.u32 1, %s1215_s21   ;;  %s1393_s5 = scalar_lea.vmem [#allocation5], %s768_s6 }
  0x77   : > { %s258_s25 = scalar_lea.sflag [#allocation6], %s257_s22 }
  0x78   : > { %1114 = dma.done.wait (%p1507_p6), %s258_s25, 128  }
  0x79   : > { %1116 = vsyncadd (%p1507_p6), %s258_s25, 4294967168  ;;  %p1508_p13 = scmp.eq.s32.totalorder %s1215_s21, 0 }
  0x7b   : > { %1118 = dma.done.wait (%p1508_p13), [#allocation6], 3072   ;;  %p1509_p0 = pmov %p1508_p13 }
  0x7c   : > { %v1154_v0 = vmov 0.0   ;;  %vm1155_vm0 = vmmov 0   ;;  %v942_v1 = vld [vmem:[#allocation7 + $0x40] sm:$0xff]   ;;  %v945_v4 = vld [vmem:[#allocation7 + $0x48] sm:$0xff]   ;;  %v948_v7 = vld [vmem:[#allocation7 + $0x50] sm:$0xff]   ;;  %vm329_vm2 = vcmask 1046528  }
  0x7d   : > { %1120 = vsyncadd (%p1509_p0), [#allocation6], 4294964224  ;;  %838 = vmatprep.subr.bf16.mxu1 %v1154_v0  ;;  %854 = vmatprep.mubr.msk.bf16.mxu1 %vm1155_vm0, %v1154_v0  ;;  %v943_v2 = vld [vmem:[#allocation7] sm:$0xff]   ;;  %v946_v5 = vld [vmem:[#allocation7 + $0x8] sm:$0xff]   ;;  %vm315_vm1 = vsmask.f32 7424 }
  0x7e   : > { %807 = vmatprep.subr.bf16.mxu0 %v942_v1  ;;  %v944_v3 = vld [vmem:[#allocation7 + $0x80] sm:$0xff]   ;;  %v947_v6 = vld [vmem:[#allocation7 + $0x88] sm:$0xff]   ;;  %v949_v8 = vld [vmem:[#allocation7 + $0x10] sm:$0xff]   ;;  %s771_s21 = sshll.u32 %s1382_s19, 4  ;;  %s806_s12 = sshll.u32 %s1139_s18, 8 }
  0x7f   : > { %808 = vmatpush3.bf16.msra.mxu0 %v943_v2  ;;  %839 = vmatpush3.bf16.msra.mxu1 %v944_v3  ;;  %v950_v9 = vld [vmem:[#allocation7 + $0x90] sm:$0xff]   ;;  %v951_v10 = vld [vmem:[#allocation7 + $0x58] sm:$0xff]   ;;  %v954_v13 = vld [vmem:[#allocation7 + $0x60] sm:$0xff]   ;;  %s294_s10 = scalar_lea.vmem [#allocation8], %s771_s21  ;;  %s1424_s2 = scalar_lea.hbm %s1477_s4, %s806_s12 }
  0x80   : > { %809 = vmatprep.subr.bf16.mxu0 %v945_v4  ;;  %840 = vmatprep.subr.bf16.mxu1 %v1154_v0  ;;  %v952_v11 = vld [vmem:[#allocation7 + $0x18] sm:$0xff]   ;;  %v955_v14 = vld [vmem:[#allocation7 + $0x20] sm:$0xff]   ;;  %v957_v16 = vld [vmem:[#allocation7 + $0x68] sm:$0xff]   ;;  %s633_s14 = sshll.u32 %s294_s10, 4  ;;  %s618_s30 = scalar_lea.sflag [#allocation4], %s1382_s19  ;;  %s1419_s14 = int_to_ptr.vmem [resolvable:$true] %s633_s14 }
  0x81   : > { %v953_v12 = vld [vmem:[#allocation7 + $0x98] sm:$0xff]   ;;  %v956_v15 = vld [vmem:[#allocation7 + $0xa0] sm:$0xff]   ;;  %v958_v17 = vld [vmem:[#allocation7 + $0x28] sm:$0xff]   ;;  %s1057_s26 = scalar_lea.vmem %s1419_s14, 256  ;;  %s1156_s18 = smov [#allocation8]  }
  0x82   : > { %v959_v18 = vld [vmem:[#allocation7 + $0xa8] sm:$0xff]   ;;  %v960_v19 = vld [vmem:[#allocation7 + $0x70] sm:$0xff]   ;;  %v963_v22 = vld [vmem:[#allocation7 + $0x78] sm:$0xff]   ;;  %p1058_p5 = scmp.ne.s32.totalorder %s1419_s14, %s1057_s26  ;;  %s1061_s13 = sshll.u32 %s1156_s18, 4  ;;  %s1062_s13 = int_to_ptr.vmem [resolvable:$false] %s1061_s13 }
  0x83   : > { %810 = vmatpush3.bf16.msra.mxu0 %v946_v5  ;;  %841 = vmatpush3.bf16.msra.mxu1 %v947_v6  ;;  %v961_v20 = vld [vmem:[#allocation7 + $0x30] sm:$0xff]   ;;  %v965_v23 = vld [vmem:[%s1386_s11] sm:$0xff]   ;;  %v964_v28 = vld [vmem:[#allocation7 + $0x38] sm:$0xff]   ;;  %s1063_s0 = scalar_lea.vmem %s1062_s13, 512  ;;  %p1064_p2 = scmp.lt.s32.totalorder %s1419_s14, %s1062_s13 }
  0x84   : > { %811 = vmatprep.subr.bf16.mxu0 %v948_v7  ;;  %842 = vmatprep.subr.bf16.mxu1 %v1154_v0  ;;  %v962_v21 = vld [vmem:[#allocation7 + $0xb0] sm:$0xff]   ;;  %v317_v25 = vshrl.u32 %v965_v23, 16  ;;  %v319_v26 = vshll.u32 %v965_v23, 16  ;;  %v967_v31 = vld [vmem:[#allocation7 + $0xb8] sm:$0xff]   ;;  %v330_v32 = vrot.slane %v965_v23, 1  ;;  %p1059_p9 = pnand %p1058_p5, %p1279_p10  ;;  %p1065_p7 = scmp.lt.s32.totalorder %s1063_s0, %s1057_s26 }
  0x85   : > { %v966_v24 = vld [vmem:[%s1393_s5] sm:$0xff]   ;;  %v774_v39 = vld [vmem:[%s1476_s3] ss:$0 sm:$0xff] }
  0x86   : > { %v324_v27 = vshll.u32 %v966_v24, 16  ;;  %v321_v29 = vrot.slane %v319_v26, 1  ;;  %v331_v33 = vrot.slane %v966_v24, 1  ;;  %p1060_p1 = pneg %p1059_p9  ;;  %p1066_p4 = por %p1065_p7, %p1064_p2 }
  0x87   : > { %812 = vmatpush3.bf16.msra.mxu0 %v949_v8  ;;  %843 = vmatpush3.bf16.msra.mxu1 %v950_v9 }
  0x88   : > { %813 = vmatprep.subr.bf16.mxu0 %v951_v10  ;;  %844 = vmatprep.subr.bf16.mxu1 %v1154_v0  ;;  %v326_v30 = vrot.slane %v324_v27, 1  ;;  %v322_v34 = vor.u32 %v321_v29, %v317_v25  ;;  %v332_v36 = vsel %vm329_vm2, %v330_v32, %v331_v33  ;;  %p1067_p8 = pnand %p1066_p4, %p1060_p1 }
  0x8a   : > { %v327_v35 = vsel %vm315_vm1, %v322_v34, %v326_v30 }
  0x8b   : > { %814 = vmatpush3.bf16.msra.mxu0 %v952_v11  ;;  %845 = vmatpush3.bf16.msra.mxu1 %v953_v12 }
  0x8c   : > { %815 = vmatprep.subr.bf16.mxu0 %v954_v13  ;;  %846 = vmatprep.subr.bf16.mxu1 %v1154_v0 }
  0x8d   : > { %565 = vmatprep.mubr.bf16.mxu0 %v327_v35 }
  0x8f   : > { %816 = vmatpush3.bf16.msra.mxu0 %v955_v14  ;;  %847 = vmatpush3.bf16.msra.mxu1 %v956_v15 }
  0x90   : > { %817 = vmatprep.subr.bf16.mxu0 %v957_v16  ;;  %848 = vmatprep.subr.bf16.mxu1 %v1154_v0 }
  0x93   : > { %818 = vmatpush3.bf16.msra.mxu0 %v958_v17  ;;  %849 = vmatpush3.bf16.msra.mxu1 %v959_v18 }
  0x94   : > { %819 = vmatprep.subr.bf16.mxu0 %v960_v19  ;;  %850 = vmatprep.subr.bf16.mxu1 %v1154_v0 }
  0x97   : > { %820 = vmatpush3.bf16.msra.mxu0 %v961_v20  ;;  %851 = vmatpush3.bf16.msra.mxu1 %v962_v21 }
  0x98   : > { %821 = vmatprep.subr.bf16.mxu0 %v963_v22  ;;  %852 = vmatprep.subr.bf16.mxu1 %v1154_v0 }
  0x9b   : > { %822 = vmatpush3.bf16.msra.mxu0 %v964_v28  ;;  %853 = vmatpush3.bf16.msra.mxu1 %v967_v31 }
  0x9e   : > { %566 = vmatmul.mubr.bf16.vlgmr.msra.gmra.mrb[0].mxu0 %v965_v23  ;;  %855 = vmatmul.mubr.bf16.vlgmr.msra.gmra.mrb[0].mxu1 %v332_v36 }
 0x171   : > { %v823_v37 = vpop.f32.mrb[0].mxu0  ;;  %v608_v40 = vpop.f32.mrb[0].mxu1 }
 0x172   : > { %v824_v38 = vpop.f32.mrb[1].mxu0  ;;  %v856_v43 = vpop.f32.mrb[1].mxu1 }
 0x173   : > { %v825_v41 = vadd.f32 %v824_v38, %v823_v37  ;;  %v826_v42 = vpop.f32.mrb[2].mxu0  ;;  %v611_v45 = vpop.f32.mrb[2].mxu1 }
 0x174   : > { %v827_v44 = vpop.f32.mrb[3].mxu0  ;;  %v857_v48 = vpop.f32.mrb[3].mxu1 }
 0x175   : > { %v568_v46 = vadd.f32 %v825_v41, %v774_v39  ;;  %v828_v47 = vadd.f32 %v827_v44, %v826_v42 }
 0x177   : > { %v609_v49 = vadd.f32 %v608_v40, %v568_v46  ;;  %v571_v50 = vadd.f32 %v828_v47, %v774_v39 }
 0x179   : > { %615 = vst [vmem:[%s294_s10] sm:$0xff] %v609_v49  ;;  %v612_v51 = vadd.f32 %v611_v45, %v571_v50 }
 0x17b   : > { %616 = vst [vmem:[%s294_s10 + $0x8] sm:$0xff] %v612_v51 }
 0x17c   : > { %1070 = shalt.err (!%p1067_p8)
}
 0x17d   : > { %s1071_s29 = scalar_lea.hbm %s1424_s2, 256  ;;  %s1075_s7 = scalar_lea.hbm %s1477_s4, 512 }
 0x17e   : > { %p1072_p12 = scmp.ne.s32.totalorder %s1424_s2, %s1071_s29  ;;  %p1076_p6 = scmp.lt.u32.totalorder %s1424_s2, %s1477_s4 }
 0x17f   : > { %p1077_p13 = scmp.lt.u32.totalorder %s1075_s7, %s1071_s29  ;;  %p1079_p5 = scmp.lt.u32.totalorder %s1071_s29, %s1424_s2 }
 0x180   : > { %p1073_p11 = pnand %p1072_p12, %p1279_p10 }
 0x181   : > { %p1078_p0 = por %p1077_p13, %p1076_p6 }
 0x182   : > { %p1074_p3 = pneg %p1073_p11 }
 0x183   : > { %p1080_p9 = por %p1079_p5, %p1078_p0 }
 0x185   : > { %p1081_p1 = pnand %p1080_p9, %p1074_p3 }
 0x187   : > { %1084 = shalt.err (!%p1081_p1)
}
 0x188   : > { %s1157_s25 = smov 128   ;;  %s1158_s5 = smov 8  }
 0x189   : > { %866 = dma.vmem_to_hbm [thread:$0]  (%p1279_p10), %s1419_s14, 256, %s1424_s2, %s618_s30, %s1157_s25, %s1157_s25, %s1158_s5  }
 0x18a PF: > { %s648_s21 = sand.u32 1, %s1127_s15   ;;  %p1510_p2 = scmp.ne.s32.totalorder %s1493_s24, 0 }
 0x18b   : > { %p1511_p7 = scmp.ge.s32.totalorder %s1147_s20, 2  ;;  %s649_s23 = scalar_lea.sflag [#allocation4], %s648_s21 }
 0x18d   : > { %p880_p4 = pnand %p1511_p7, %p1510_p2 }
 0x18f   : > { %1122 = dma.done.wait (!%p880_p4), %s649_s23, 256  }
 0x190   : > { %1124 = vsyncadd (!%p880_p4), %s649_s23, 4294967040  ;;  %s23_s20 = sadd.s32 1, %s1147_s20   ;;  %s1512_s9 = sld [smem:[#allocation13_spill]] }
 0x191   : > { %p20_p8 = scmp.ge.s32.totalorder %s23_s20, 4   ;;  %s1513_s17 = sld [smem:[#allocation16_spill]] }
 0x192   : > { %s1514_s18 = sld [smem:[#allocation14_spill]]  ;;  %s1515_s19 = sld [smem:[#allocation15_spill]] }
 0x193   : > { %s1516_s15 = smov %s1131_s16  ;;  %22 = sbr.rel (!%p20_p8) target bundleno = 11 (0xb), region = 98 }
 0x196   : > { %s1517_s16 = smov %s1512_s9 }
 0x19a   :  { %654 = vsyncpa [#allocation3], 1 }
 0x19b   :  { %656 = vsyncpa [#allocation3 + $0x1], 1 }
 0x19c   :  { %657 = vsyncpa [#allocation6], 1 }
 0x19d   :  { %659 = vsyncpa [#allocation6 + $0x1], 1 }
 0x19e   :  { %660 = vsyncpa [#allocation4], 1 }
 0x19f   :  { %662 = vsyncpa [#allocation4 + $0x1], 1 }

</bundles_post_ra>
